<compile_context>
chip_gen: v6e
topology: v6e:2x2x1
jax: 0.10.0
libtpu: 0.0.40
codegen_flags: <defaults>
</compile_context>

<pallas_src>
import functools

import jax
import jax.numpy as jnp
from jax.experimental import pallas as pl
from jax.experimental.pallas import tpu as pltpu

LANE = 128
SUBLANE = 8
TARGET_TILE_ROWS = 2048   # 2048 x 128 f32 = 1 MiB per operand per grid step
CHUNK_ROWS = 512          # inner sub-slab (bounds VMEM temporaries / live vregs)


def _round_up(a, b):
    return ((a + b - 1) // b) * b


def _bce_dice_kernel(x_ref, t_ref, bce_ref, int_ref, den_ref, *,
                     n, tile_rows, chunk_rows, need_mask):
    i = pl.program_id(0)

    @pl.when(i == 0)
    def _():
        bce_ref[...] = jnp.zeros_like(bce_ref)
        int_ref[...] = jnp.zeros_like(int_ref)
        den_ref[...] = jnp.zeros_like(den_ref)

    n_chunks = tile_rows // chunk_rows
    folds = chunk_rows // SUBLANE
    tile_row0 = i * tile_rows

    def fold(v):
        if folds == 1:
            return v
        # (chunk_rows, 128) -> (folds, 8, 128); axis-0 sum is aligned
        # vreg + vreg VPU adds (no per-step XLU cross-lane reduction).
        return jnp.sum(v.reshape(folds, SUBLANE, LANE), axis=0)

    def process(masked):
        for c in range(n_chunks):
            r0 = c * chunk_rows
            x = x_ref[pl.ds(r0, chunk_rows), :].astype(jnp.float32)
            t = t_ref[pl.ds(r0, chunk_rows), :].astype(jnp.float32)

            # Single shared exponential: e = exp(-|x|).
            e = jnp.exp(-jnp.abs(x))
            one_plus_e = 1.0 + e
            # Numerically-stable BCE-with-logits (matches torch's
            # BCEWithLogitsLoss): max(x, 0) - x*t + log(1 + exp(-|x|)).
            bce = jnp.maximum(x, 0.0) - x * t + jnp.log(one_plus_e)
            # sigmoid(x) = [x >= 0 ? 1 : e] / (1 + e)
            p = jnp.where(x >= 0.0, 1.0, e) * pl.reciprocal(one_plus_e)
            pt = p * t
            den = p + t          # Dice denominator only needs the sum p + t

            if masked:
                # Last tile only: drop out-of-bounds rows (undefined data) and
                # wrapper-padded elements via select (never multiply: 0*NaN=NaN).
                row = jax.lax.broadcasted_iota(jnp.int32, (chunk_rows, LANE), 0)
                col = jax.lax.broadcasted_iota(jnp.int32, (chunk_rows, LANE), 1)
                elem = (tile_row0 + r0 + row) * LANE + col
                valid = elem < n
                bce = jnp.where(valid, bce, 0.0)
                pt = jnp.where(valid, pt, 0.0)
                den = jnp.where(valid, den, 0.0)

            bce_ref[...] += fold(bce)
            int_ref[...] += fold(pt)
            den_ref[...] += fold(den)

    if need_mask:
        last = pl.num_programs(0) - 1

        @pl.when(i < last)
        def _():
            process(False)

        @pl.when(i == last)
        def _():
            process(True)
    else:
        process(False)


def bce_dice_loss(inputs, targets, smooth=1e-5):
    """Pallas TPU implementation of BCEDiceLoss.forward (weight=None)."""
    x = inputs.reshape(-1)
    t = targets.reshape(-1)
    n = x.shape[0]

    rows = pl.cdiv(n, LANE)
    pad = rows * LANE - n
    if pad:
        # Rare fallback (n not a multiple of 128): pad < 128 trailing elements
        # so the flat stream can be viewed as (rows, 128).  Padded zeros are
        # masked inside the kernel, so they contribute nothing to the sums.
        x = jnp.pad(x, (0, pad))
        t = jnp.pad(t, (0, pad))
    # Free reshape (bitcast) in the common case -- no extra HBM traffic.
    x2 = x.reshape(rows, LANE)
    t2 = t.reshape(rows, LANE)

    tile_rows = min(TARGET_TILE_ROWS, _round_up(rows, SUBLANE))
    steps = pl.cdiv(rows, tile_rows)
    chunk_rows = CHUNK_ROWS if tile_rows % CHUNK_ROWS == 0 else tile_rows
    # Masking is only needed when the grid over-covers the valid elements
    # (partial OOB last block and/or wrapper padding).
    need_mask = steps * tile_rows * LANE != n

    kernel = functools.partial(
        _bce_dice_kernel, n=n, tile_rows=tile_rows, chunk_rows=chunk_rows,
        need_mask=need_mask)

    in_spec = pl.BlockSpec((tile_rows, LANE), lambda i: (i, 0))
    acc_spec = pl.BlockSpec((SUBLANE, LANE), lambda i: (0, 0))
    acc_shape = jax.ShapeDtypeStruct((SUBLANE, LANE), jnp.float32)

    bce_p, int_p, den_p = pl.pallas_call(
        kernel,
        out_shape=(acc_shape, acc_shape, acc_shape),
        grid_spec=pltpu.PrefetchScalarGridSpec(
            num_scalar_prefetch=0,
            grid=(steps,),
            in_specs=[in_spec, in_spec],
            out_specs=[acc_spec, acc_spec, acc_spec],
        ),
        compiler_params=pltpu.CompilerParams(
            dimension_semantics=("arbitrary",)),
    )(x2, t2)

    # Tiny epilogue: 3 x (8, 128) reductions + scalar math.
    bce_mean = jnp.sum(bce_p) / n
    intersection = jnp.sum(int_p)
    dice = 1.0 - (2.0 * intersection + smooth) / (jnp.sum(den_p) + smooth)
    return bce_mean + dice


def _reference_loss(inputs, targets, smooth=1e-5):
    x = inputs.reshape(-1).astype(jnp.float32)
    t = targets.reshape(-1).astype(jnp.float32)
    bce = jnp.mean(jnp.maximum(x, 0.0) - x * t + jnp.log1p(jnp.exp(-jnp.abs(x))))
    p = jax.nn.sigmoid(x)
    inter = jnp.sum(p * t)
    dice = 1.0 - (2.0 * inter + smooth) / (jnp.sum(p) + jnp.sum(t) + smooth)
    return bce + dice


if __name__ == "__main__":
    key = jax.random.PRNGKey(0)
    k1, k2 = jax.random.split(key)

    # NCHW segmentation logits / binary targets, as the PyTorch module expects.
    x = jax.random.normal(k1, (2, 4, 16, 16), dtype=jnp.float32)
    t = (jax.random.uniform(k2, (2, 4, 16, 16)) > 0.5).astype(jnp.float32)
    loss = jax.block_until_ready(bce_dice_loss(x, t))
    ref = jax.block_until_ready(_reference_loss(x, t))
    assert jnp.allclose(loss, ref, rtol=1e-5, atol=1e-5), (loss, ref)

    # Ragged shape (n not a multiple of 128) exercises the masked tail path.
    xr = jax.random.normal(k1, (2, 3, 15, 15), dtype=jnp.float32)
    tr = (jax.random.uniform(k2, (2, 3, 15, 15)) > 0.5).astype(jnp.float32)
    loss_r = jax.block_until_ready(bce_dice_loss(xr, tr))
    ref_r = jax.block_until_ready(_reference_loss(xr, tr))
    assert jnp.allclose(loss_r, ref_r, rtol=1e-5, atol=1e-5), (loss_r, ref_r)

    print("KERNEL_OK")
</pallas_src>

<mosaic_0001>
module attributes {stable_mosaic.version = 11 : i64} {
  func.func @_bce_dice_kernel(%arg0: i32, %arg1: memref<16x128xf32, #tpu.memory_space<vmem>>, %arg2: memref<16x128xf32, #tpu.memory_space<vmem>>, %arg3: memref<8x128xf32, #tpu.memory_space<vmem>>, %arg4: memref<8x128xf32, #tpu.memory_space<vmem>>, %arg5: memref<8x128xf32, #tpu.memory_space<vmem>>) attributes {dimension_semantics = [#tpu.dimension_semantics<arbitrary>], iteration_bounds = array<i64: 1>, scalar_prefetch = 0 : i64, scratch_operands = 0 : i64, tpu.core_type = #tpu.core_type<tc>, window_params = [{transform_indices = @transform_0, window_bounds = array<i64: 16, 128>}, {transform_indices = @transform_1, window_bounds = array<i64: 16, 128>}, {pipeline_mode = #tpu.pipeline_mode<synchronous>, transform_indices = @transform_2, window_bounds = array<i64: 8, 128>}, {pipeline_mode = #tpu.pipeline_mode<synchronous>, transform_indices = @transform_3, window_bounds = array<i64: 8, 128>}, {pipeline_mode = #tpu.pipeline_mode<synchronous>, transform_indices = @transform_4, window_bounds = array<i64: 8, 128>}]} {
    %c0_i32 = arith.constant 0 : i32
    %0 = arith.cmpi eq, %arg0, %c0_i32 : i32
    %1 = arith.extui %0 : i1 to i32
    %c0_i32_0 = arith.constant 0 : i32
    %2 = arith.cmpi ne, %1, %c0_i32_0 : i32
    scf.if %2 {
      %cst_23 = arith.constant 0.000000e+00 : f32
      %40 = vector.broadcast %cst_23 : f32 to vector<8x128xf32>
      %c0_24 = arith.constant 0 : index
      %c0_25 = arith.constant 0 : index
      %41 = vector.load %arg3[%c0_24, %c0_25] : memref<8x128xf32, #tpu.memory_space<vmem>>, vector<8x128xf32>
      tpu.vector_store %arg3[%c0_24, %c0_25], %40 {strides = array<i32>} : memref<8x128xf32, #tpu.memory_space<vmem>>, vector<8x128xf32>,
      %cst_26 = arith.constant 0.000000e+00 : f32
      %42 = vector.broadcast %cst_26 : f32 to vector<8x128xf32>
      %c0_27 = arith.constant 0 : index
      %c0_28 = arith.constant 0 : index
      %43 = vector.load %arg4[%c0_27, %c0_28] : memref<8x128xf32, #tpu.memory_space<vmem>>, vector<8x128xf32>
      tpu.vector_store %arg4[%c0_27, %c0_28], %42 {strides = array<i32>} : memref<8x128xf32, #tpu.memory_space<vmem>>, vector<8x128xf32>,
      %cst_29 = arith.constant 0.000000e+00 : f32
      %44 = vector.broadcast %cst_29 : f32 to vector<8x128xf32>
      %c0_30 = arith.constant 0 : index
      %c0_31 = arith.constant 0 : index
      %45 = vector.load %arg5[%c0_30, %c0_31] : memref<8x128xf32, #tpu.memory_space<vmem>>, vector<8x128xf32>
      tpu.vector_store %arg5[%c0_30, %c0_31], %44 {strides = array<i32>} : memref<8x128xf32, #tpu.memory_space<vmem>>, vector<8x128xf32>,
    } else {
    }
    %c0 = arith.constant 0 : index
    %c0_1 = arith.constant 0 : index
    %3 = vector.load %arg1[%c0, %c0_1] : memref<16x128xf32, #tpu.memory_space<vmem>>, vector<16x128xf32>
    %c0_2 = arith.constant 0 : index
    %c0_3 = arith.constant 0 : index
    %4 = vector.load %arg2[%c0_2, %c0_3] : memref<16x128xf32, #tpu.memory_space<vmem>>, vector<16x128xf32>
    %5 = math.absf %3 : vector<16x128xf32>
    %cst = arith.constant 0.000000e+00 : f32
    %6 = vector.broadcast %cst : f32 to vector<16x128xf32>
    %7 = arith.subf %6, %5 : vector<16x128xf32>
    %8 = math.exp %7 : vector<16x128xf32>
    %cst_4 = arith.constant 1.000000e+00 : f32
    %9 = vector.broadcast %cst_4 : f32 to vector<16x128xf32>
    %10 = arith.addf %9, %8 : vector<16x128xf32>
    %cst_5 = arith.constant 0.000000e+00 : f32
    %11 = vector.broadcast %cst_5 : f32 to vector<16x128xf32>
    %12 = arith.maximumf %3, %11 : vector<16x128xf32>
    %13 = arith.mulf %3, %4 : vector<16x128xf32>
    %14 = arith.subf %12, %13 : vector<16x128xf32>
    %15 = math.log %10 : vector<16x128xf32>
    %16 = arith.addf %14, %15 : vector<16x128xf32>
    %cst_6 = arith.constant 0.000000e+00 : f32
    %17 = vector.broadcast %cst_6 : f32 to vector<16x128xf32>
    %18 = arith.cmpf oge, %3, %17 : vector<16x128xf32>
    %cst_7 = arith.constant 1.000000e+00 : f32
    %19 = vector.broadcast %cst_7 : f32 to vector<16x128xf32>
    %20 = arith.select %18, %19, %8 : vector<16x128xi1>, vector<16x128xf32>
    %21 = tpu.reciprocal %10 : vector<16x128xf32> -> vector<16x128xf32>
    %22 = arith.mulf %20, %21 : vector<16x128xf32>
    %23 = arith.mulf %22, %4 : vector<16x128xf32>
    %24 = arith.addf %22, %4 : vector<16x128xf32>
    %c0_8 = arith.constant 0 : index
    %c0_9 = arith.constant 0 : index
    %25 = vector.load %arg3[%c0_8, %c0_9] : memref<8x128xf32, #tpu.memory_space<vmem>>, vector<8x128xf32>
    %26 = vector.shape_cast %16 : vector<16x128xf32> to vector<2x8x128xf32>
    %cst_10 = arith.constant dense<0.000000e+00> : vector<8x128xf32>
    %27 = vector.multi_reduction <add>, %26, %cst_10 [0] : vector<2x8x128xf32> to vector<8x128xf32>
    %28 = arith.addf %25, %27 : vector<8x128xf32>
    %c0_11 = arith.constant 0 : index
    %c0_12 = arith.constant 0 : index
    %29 = vector.load %arg3[%c0_11, %c0_12] : memref<8x128xf32, #tpu.memory_space<vmem>>, vector<8x128xf32>
    tpu.vector_store %arg3[%c0_11, %c0_12], %28 {strides = array<i32>} : memref<8x128xf32, #tpu.memory_space<vmem>>, vector<8x128xf32>,
    %c0_13 = arith.constant 0 : index
    %c0_14 = arith.constant 0 : index
    %30 = vector.load %arg4[%c0_13, %c0_14] : memref<8x128xf32, #tpu.memory_space<vmem>>, vector<8x128xf32>
    %31 = vector.shape_cast %23 : vector<16x128xf32> to vector<2x8x128xf32>
    %cst_15 = arith.constant dense<0.000000e+00> : vector<8x128xf32>
    %32 = vector.multi_reduction <add>, %31, %cst_15 [0] : vector<2x8x128xf32> to vector<8x128xf32>
    %33 = arith.addf %30, %32 : vector<8x128xf32>
    %c0_16 = arith.constant 0 : index
    %c0_17 = arith.constant 0 : index
    %34 = vector.load %arg4[%c0_16, %c0_17] : memref<8x128xf32, #tpu.memory_space<vmem>>, vector<8x128xf32>
    tpu.vector_store %arg4[%c0_16, %c0_17], %33 {strides = array<i32>} : memref<8x128xf32, #tpu.memory_space<vmem>>, vector<8x128xf32>,
    %c0_18 = arith.constant 0 : index
    %c0_19 = arith.constant 0 : index
    %35 = vector.load %arg5[%c0_18, %c0_19] : memref<8x128xf32, #tpu.memory_space<vmem>>, vector<8x128xf32>
    %36 = vector.shape_cast %24 : vector<16x128xf32> to vector<2x8x128xf32>
    %cst_20 = arith.constant dense<0.000000e+00> : vector<8x128xf32>
    %37 = vector.multi_reduction <add>, %36, %cst_20 [0] : vector<2x8x128xf32> to vector<8x128xf32>
    %38 = arith.addf %35, %37 : vector<8x128xf32>
    %c0_21 = arith.constant 0 : index
    %c0_22 = arith.constant 0 : index
    %39 = vector.load %arg5[%c0_21, %c0_22] : memref<8x128xf32, #tpu.memory_space<vmem>>, vector<8x128xf32>
    tpu.vector_store %arg5[%c0_21, %c0_22], %38 {strides = array<i32>} : memref<8x128xf32, #tpu.memory_space<vmem>>, vector<8x128xf32>,
    return
  }
  func.func @transform_0(%arg0: i32) -> (i32, i32) {
    %c0_i32 = arith.constant 0 : i32
    %c0_i32_0 = arith.constant 0 : i32
    return %arg0, %c0_i32 : i32, i32
  }
  func.func @transform_1(%arg0: i32) -> (i32, i32) {
    %c0_i32 = arith.constant 0 : i32
    %c0_i32_0 = arith.constant 0 : i32
    return %arg0, %c0_i32 : i32, i32
  }
  func.func @transform_2(%arg0: i32) -> (i32, i32) {
    %c0_i32 = arith.constant 0 : i32
    %c0_i32_0 = arith.constant 0 : i32
    %c0_i32_1 = arith.constant 0 : i32
    return %c0_i32, %c0_i32_0 : i32, i32
  }
  func.func @transform_3(%arg0: i32) -> (i32, i32) {
    %c0_i32 = arith.constant 0 : i32
    %c0_i32_0 = arith.constant 0 : i32
    %c0_i32_1 = arith.constant 0 : i32
    return %c0_i32, %c0_i32_0 : i32, i32
  }
  func.func @transform_4(%arg0: i32) -> (i32, i32) {
    %c0_i32 = arith.constant 0 : i32
    %c0_i32_0 = arith.constant 0 : i32
    %c0_i32_1 = arith.constant 0 : i32
    return %c0_i32, %c0_i32_0 : i32, i32
  }
}

</mosaic_0001>

<bundles_post_ra>
// kernel: tpu_custom_call.1
= control target key start
LH: loop header
LB: loop body
LE: loop exit
PB: predicated region body
PF: predicated region fallthrough
CT: control target
= control target key end

     0   :  { %10 = vsyncpa [#allocation3], 0  ;;  %s319_s0 = inlined_call_operand.hbm [shape: f32[16,128], index: 0, kind: input, shape index: {}]   ;;  %s320_s1 = inlined_call_operand.hbm [shape: f32[16,128], index: 1, kind: input, shape index: {}]   ;;  %s321_s2 = inlined_call_operand.hbm [shape: f32[8,128], index: 2, kind: output, shape index: {0}]   ;;  %s322_s3 = inlined_call_operand.hbm [shape: f32[8,128], index: 3, kind: output, shape index: {1}]   ;;  %s323_s4 = inlined_call_operand.hbm [shape: f32[8,128], index: 4, kind: output, shape index: {2}]  }
   0x1   :  { %11 = vsyncpa [#allocation6], 0 }
   0x2   :  { %12 = vsyncpa [#allocation4], 0 }
   0x3   :  { %13 = vsyncpa [#allocation9], 0  ;;  %s272_s15 = smov [#allocation2]  }
   0x4   :  { %s19_s16 = sshll.u32 %s272_s15, 4  ;;  %s20_s16 = int_to_ptr.vmem [resolvable:$true] %s19_s16 }
   0x5   :  { %s172_s17 = scalar_lea.vmem %s20_s16, 256  ;;  %p177_p1 = scmp.lt.s32.totalorder %s20_s16, %s20_s16 }
   0x6   :  { %p173_p0 = scmp.ne.s32.totalorder %s20_s16, %s172_s17  ;;  %p178_p2 = scmp.lt.s32.totalorder %s172_s17, %s172_s17 }
   0x8   :  { %p179_p3 = por %p178_p2, %p177_p1 }
   0xa   :  { %p180_p4 = pnand %p179_p3, %p173_p0 }
   0xc   :  { %183 = shalt.err (!%p180_p4)
}
   0xd   :  { %s273_s18 = smov 128   ;;  %s274_s19 = smov 8  }
   0xe   :  { %25 = dma.hbm_to_vmem [thread:$0]  %s319_s0, 256, %s20_s16, [#allocation3], %s273_s18, %s273_s18, %s274_s19  }
   0xf   :  { %s275_s22 = smov [#allocation5]  }
  0x10   :  { %s31_s23 = sshll.u32 %s275_s22, 4  ;;  %s32_s23 = int_to_ptr.vmem [resolvable:$true] %s31_s23 }
  0x11   :  { %s192_s24 = scalar_lea.vmem %s32_s23, 256  ;;  %p197_p6 = scmp.lt.s32.totalorder %s32_s23, %s32_s23 }
  0x12   :  { %p193_p5 = scmp.ne.s32.totalorder %s32_s23, %s192_s24  ;;  %p198_p7 = scmp.lt.s32.totalorder %s192_s24, %s192_s24 }
  0x14   :  { %p199_p8 = por %p198_p7, %p197_p6 }
  0x16   :  { %p200_p9 = pnand %p199_p8, %p193_p5 }
  0x18   :  { %203 = shalt.err (!%p200_p9)
}
  0x19   :  { %37 = dma.hbm_to_vmem [thread:$0]  %s320_s1, 256, %s32_s23, [#allocation6], %s273_s18, %s273_s18, %s274_s19  }
  0x1a   :  { %264 = dma.done.wait [#allocation3], 256  }
  0x1b   :  { %265 = vsyncadd [#allocation3], 4294967040 }
  0x1c   :  { %266 = dma.done.wait [#allocation6], 256  }
  0x1d   :  { %267 = vsyncadd [#allocation6], 4294967040  ;;  %v51_v0 = vld [vmem:[#allocation2] sm:$0xff]  ;;  %v52_v1 = vld [vmem:[#allocation2 + $0x8] sm:$0xff]  ;;  %s276_s0 = smov [#allocation8]   ;;  %s277_s27 = smov [#allocation10]  }
  0x1e   :  { %v55_v2 = vand.u32 2147483647, %v51_v0  ;;  %v56_v3 = vand.u32 2147483647, %v52_v1  ;;  %v53_v12 = vld [vmem:[#allocation5] sm:$0xff]  ;;  %v54_v13 = vld [vmem:[#allocation5 + $0x8] sm:$0xff] }
  0x1f   :  { %vm77_vm0 = vcmp.ge.f32.partialorder %v51_v0, 0.0  ;;  %vm78_vm1 = vcmp.ge.f32.partialorder %v52_v1, 0.0  ;;  %v65_v14 = vmax.f32 %v51_v0, 0.0  ;;  %v67_v15 = vmul.f32 %v53_v12, %v51_v0  ;;  %s117_s1 = sshll.u32 %s276_s0, 4  ;;  %s127_s28 = sshll.u32 %s277_s27, 4  ;;  %s118_s1 = int_to_ptr.vmem [resolvable:$true] %s117_s1  ;;  %s128_s28 = int_to_ptr.vmem [resolvable:$true] %s127_s28 }
  0x20   :  { %v57_v4 = vsub.f32 0.0, %v55_v2  ;;  %v58_v5 = vsub.f32 0.0, %v56_v3  ;;  %v66_v17 = vmax.f32 %v52_v1, 0.0  ;;  %v68_v18 = vmul.f32 %v54_v13, %v52_v1  ;;  %s278_s29 = smov [#allocation7]   ;;  %s204_s5 = scalar_lea.vmem %s118_s1, 128 }
  0x21   :  { %v69_v23 = vsub.f32 %v65_v14, %v67_v15  ;;  %s107_s30 = sshll.u32 %s278_s29, 4  ;;  %p205_p10 = scmp.ne.s32.totalorder %s118_s1, %s204_s5  ;;  %s108_s30 = int_to_ptr.vmem [resolvable:$true] %s107_s30 }
  0x22   :  { %v59_v6 = vmul.f32 1.442695, %v57_v4  ;;  %v61_v7 = vmul.f32 1.442695, %v58_v5  ;;  %v70_v26 = vsub.f32 %v66_v17, %v68_v18  ;;  %p209_p11 = scmp.lt.s32.totalorder %s118_s1, %s118_s1  ;;  %p210_p12 = scmp.lt.s32.totalorder %s204_s5, %s204_s5 }
  0x24   :  { %152 = vpow2.f32 %v59_v6  ;;  %p211_p13 = por %p210_p12, %p209_p11 }
  0x25   :  { %154 = vpow2.f32 %v61_v7 }
  0x26   :  { %p212_p0 = pnand %p211_p13, %p205_p10 }
  0x31   :  { %v153_v8 = vpop.eup %152 }
  0x32   :  { %v155_v9 = vpop.eup %154  ;;  %v63_v10 = vadd.f32 1.0, %v153_v8  ;;  %v79_v16 = vsel %vm77_vm0, 1.0, %v153_v8 }
  0x33   :  { %v64_v11 = vadd.f32 1.0, %v155_v9  ;;  %v80_v19 = vsel %vm78_vm1, 1.0, %v155_v9 }
  0x34   :  { %156 = vrcp.f32 %v63_v10 }
  0x35   :  { %158 = vrcp.f32 %v64_v11 }
  0x36   :  { %160 = vlog2.f32 %v63_v10 }
  0x37   :  { %162 = vlog2.f32 %v64_v11 }
  0x41   :  { %v157_v20 = vpop.eup %156 }
  0x42   :  { %v159_v21 = vpop.eup %158  ;;  %v83_v22 = vmul.f32 %v157_v20, %v79_v16 }
  0x43   :  { %v161_v24 = vpop.eup %160  ;;  %v84_v25 = vmul.f32 %v159_v21, %v80_v19 }
  0x44   :  { %v163_v27 = vpop.eup %162  ;;  %v85_v28 = vmul.f32 %v83_v22, %v53_v12  ;;  %v72_v29 = vmul.f32 0.6931472, %v161_v24  ;;  %v87_v30 = vadd.f32 %v83_v22, %v53_v12 }
  0x45   :  { %v86_v31 = vmul.f32 %v84_v25, %v54_v13  ;;  %v74_v32 = vmul.f32 0.6931472, %v163_v27  ;;  %v88_v33 = vadd.f32 %v84_v25, %v54_v13 }
  0x46   :  { %v75_v34 = vadd.f32 %v72_v29, %v69_v23 }
  0x47   :  { %v94_v35 = vadd.f32 %v86_v31, %v85_v28  ;;  %v76_v36 = vadd.f32 %v74_v32, %v70_v26  ;;  %v98_v37 = vadd.f32 %v88_v33, %v87_v30 }
  0x49   :  { %v90_v38 = vadd.f32 %v76_v36, %v75_v34  ;;  %96 = vst [vmem:[#allocation8] sm:$0xff] %v94_v35  ;;  %100 = vst [vmem:[#allocation10] sm:$0xff] %v98_v37 }
  0x4a   :  { %215 = shalt.err (!%p212_p0)
}
  0x4b   :  { %120 = dma.vmem_to_hbm [thread:$0]  %s118_s1, 128, %s322_s3, [#allocation9]   ;;  %92 = vst [vmem:[#allocation7] sm:$0xff] %v90_v38 }
  0x4c   :  { %s224_s8 = scalar_lea.vmem %s128_s28, 128  ;;  %p229_p2 = scmp.lt.s32.totalorder %s128_s28, %s128_s28 }
  0x4d   :  { %p225_p1 = scmp.ne.s32.totalorder %s128_s28, %s224_s8  ;;  %p230_p3 = scmp.lt.s32.totalorder %s224_s8, %s224_s8 }
  0x4f   :  { %p231_p4 = por %p230_p3, %p229_p2 }
  0x51   :  { %p232_p5 = pnand %p231_p4, %p225_p1 }
  0x53   :  { %235 = shalt.err (!%p232_p5)
}
  0x54   :  { %130 = dma.vmem_to_hbm [thread:$0]  %s128_s28, 128, %s323_s4, [#allocation9]  }
  0x55   :  { %s244_s11 = scalar_lea.vmem %s108_s30, 128  ;;  %p249_p7 = scmp.lt.s32.totalorder %s108_s30, %s108_s30 }
  0x56   :  { %p245_p6 = scmp.ne.s32.totalorder %s108_s30, %s244_s11  ;;  %p250_p8 = scmp.lt.s32.totalorder %s244_s11, %s244_s11 }
  0x58   :  { %p251_p9 = por %p250_p8, %p249_p7 }
  0x5a   :  { %p252_p10 = pnand %p251_p9, %p245_p6 }
  0x5c   :  { %255 = shalt.err (!%p252_p10)
}
  0x5d   :  { %110 = dma.vmem_to_hbm [thread:$0]  %s108_s30, 128, %s321_s2, [#allocation4]  }
  0x5e   :  { %268 = dma.done.wait [#allocation4], 128  }
  0x5f   :  { %269 = vsyncadd [#allocation4], 4294967168 }
  0x60   :  { %270 = dma.done.wait [#allocation9], 256  }
  0x61   :  { %271 = vsyncadd [#allocation9], 4294967040 }
  0x62   :  { %140 = vsyncpa [#allocation3], 1 }
  0x63   :  { %141 = vsyncpa [#allocation6], 1 }
  0x64   :  { %142 = vsyncpa [#allocation4], 1 }
  0x65   :  { %143 = vsyncpa [#allocation9], 1 }

</bundles_post_ra>
